<compile_context>
chip_gen: v7x
topology: tpu7x:2x2x1
jax: 0.10.0
libtpu: 0.0.40
codegen_flags: <defaults>
</compile_context>

<pallas_src>
import jax
import jax.numpy as jnp
from jax.experimental import pallas as pl
from jax.experimental.pallas import tpu as pltpu


def gaussian_policy_kernel(x_ref, eps_ref, a_ref,
                           w1_ref, b1_ref, w2_ref, b2_ref, w3_ref, b3_ref,
                           logstd_ref, out_ref):
    x = x_ref[...]

    # MLP hot path: 3 matmuls on the MXU + ReLU on the VPU.
    h1 = jnp.dot(x, w1_ref[...], preferred_element_type=jnp.float32) + b1_ref[...]
    h1 = jnp.maximum(h1, 0.0)
    h2 = jnp.dot(h1, w2_ref[...], preferred_element_type=jnp.float32) + b2_ref[...]
    h2 = jnp.maximum(h2, 0.0)
    mu = jnp.dot(h2, w3_ref[...], preferred_element_type=jnp.float32) + b3_ref[...]

    log_std = logstd_ref[...]                       # (1, adim), broadcasts over batch
    std = jnp.exp(log_std)                          # EUP
    inv_two_var = 0.5 * jnp.exp(-2.0 * log_std)     # EUP; exact 1/(2*std^2), no divide

    # Reparameterized sample: pi = mu + std * eps; reuse std*eps for (pi - mu).
    std_eps = std * eps_ref[...]
    pi = mu + std_eps

    # Hoisted constant part of the Gaussian log-prob (scalar per kernel invocation).
    adim = log_std.shape[1]
    half_log_2pi = 0.5 * jnp.log(2.0 * jnp.pi).astype(jnp.float32)
    csum = -(jnp.sum(log_std) + adim * half_log_2pi)

    logp_pi = csum - jnp.sum(std_eps * std_eps * inv_two_var, axis=1, keepdims=True)     # (B,1)
    diff_a = a_ref[...] - mu
    logp = csum - jnp.sum(diff_a * diff_a * inv_two_var, axis=1, keepdims=True)          # (B,1)

    # Single packed output slab: [pi | mu | logp | logp_pi]  -> (TILE_B, 2*adim+2)
    out_ref[...] = jnp.concatenate([pi, mu, logp, logp_pi], axis=1)


def gaussian_policy_forward(x, params, eps, a, *, tile_b=512):
    """x: (B, odim) f32; eps, a: (B, adim) f32; params: dict of weights.

    Returns (pi, logp, logp_pi, mu) matching PyTorch GaussianPolicy.forward
    (the Normal sample is expressed via the externally supplied eps).
    """
    B, odim = x.shape
    h1 = params["w1"].shape[1]
    h2 = params["w2"].shape[1]
    adim = params["w3"].shape[1]

    # Batch tile: multiple of 8 (sublane), capped at tile_b.  Per-tile VMEM stays tiny
    # (<1 MiB) so the only real constraint is amortizing per-step grid overhead.
    TILE_B = min(tile_b, max(8, ((B + 7) // 8) * 8))
    TILE_B = ((TILE_B + 7) // 8) * 8
    pad_B = ((B + TILE_B - 1) // TILE_B) * TILE_B
    if pad_B != B:
        pad = pad_B - B
        x = jnp.pad(x, ((0, pad), (0, 0)))
        eps = jnp.pad(eps, ((0, pad), (0, 0)))
        a = jnp.pad(a, ((0, pad), (0, 0)))

    grid = (pad_B // TILE_B,)
    out_width = 2 * adim + 2

    batch_spec = lambda w: pl.BlockSpec((TILE_B, w), lambda i: (i, 0))
    # Weights / biases / log_std: constant index_map -> fetched once, VMEM-resident.
    const_spec = lambda shape: pl.BlockSpec(shape, lambda i: (0, 0))

    cost = pl.CostEstimate(
        flops=2 * pad_B * (odim * h1 + h1 * h2 + h2 * adim),
        transcendentals=2 * adim,
        bytes_accessed=4 * (pad_B * (odim + 2 * adim + out_width)
                            + odim * h1 + h1 * h2 + h2 * adim + h1 + h2 + 2 * adim),
    )

    packed = pl.pallas_call(
        gaussian_policy_kernel,
        out_shape=jax.ShapeDtypeStruct((pad_B, out_width), jnp.float32),
        grid=grid,
        in_specs=[
            batch_spec(odim),            # x
            batch_spec(adim),            # eps
            batch_spec(adim),            # a
            const_spec((odim, h1)),      # w1
            const_spec((1, h1)),         # b1
            const_spec((h1, h2)),        # w2
            const_spec((1, h2)),         # b2
            const_spec((h2, adim)),      # w3
            const_spec((1, adim)),       # b3
            const_spec((1, adim)),       # log_std
        ],
        out_specs=pl.BlockSpec((TILE_B, out_width), lambda i: (i, 0)),
        compiler_params=pltpu.CompilerParams(dimension_semantics=("parallel",)),
        cost_estimate=cost,
    )(x, eps, a, params["w1"], params["b1"], params["w2"], params["b2"],
      params["w3"], params["b3"], params["log_std"])

    packed = packed[:B]
    pi = packed[:, :adim]
    mu = packed[:, adim:2 * adim]
    logp = packed[:, 2 * adim]
    logp_pi = packed[:, 2 * adim + 1]
    return pi, logp, logp_pi, mu


def init_params(key, odim, adim, hdims=(64, 64)):
    k1, k2, k3 = jax.random.split(key, 3)
    scale = 0.1
    return {
        "w1": scale * jax.random.normal(k1, (odim, hdims[0]), jnp.float32),
        "b1": jnp.zeros((1, hdims[0]), jnp.float32),
        "w2": scale * jax.random.normal(k2, (hdims[0], hdims[1]), jnp.float32),
        "b2": jnp.zeros((1, hdims[1]), jnp.float32),
        "w3": scale * jax.random.normal(k3, (hdims[1], adim), jnp.float32),
        "b3": jnp.zeros((1, adim), jnp.float32),
        "log_std": -0.5 * jnp.ones((1, adim), jnp.float32),  # nn.Parameter(-0.5*ones(adim))
    }


def _reference(x, params, eps, a):
    h1 = jnp.maximum(x @ params["w1"] + params["b1"], 0.0)
    h2 = jnp.maximum(h1 @ params["w2"] + params["b2"], 0.0)
    mu = h2 @ params["w3"] + params["b3"]
    std = jnp.exp(params["log_std"])
    pi = mu + std * eps
    lp = lambda v: (-((v - mu) ** 2) / (2 * std * std)
                    - params["log_std"] - 0.5 * jnp.log(2 * jnp.pi)).sum(axis=1)
    return pi, lp(a), lp(pi), mu


if __name__ == "__main__":
    # TODO(synk): torch's Normal.sample() RNG has no in-kernel equivalent; the standard
    # normal noise `eps` is supplied externally (reparameterization), and the a=None
    # branch is handled by the caller (logp is only meaningful when `a` is given).
    odim, adim = 24, 8
    key = jax.random.PRNGKey(0)
    k_param, k_x, k_eps, k_a, k_x2, k_eps2, k_a2 = jax.random.split(key, 7)
    params = init_params(k_param, odim, adim)

    # Small single-tile case (grid = (1,)).
    B = 8
    x = jax.random.normal(k_x, (B, odim), jnp.float32)
    eps = jax.random.normal(k_eps, (B, adim), jnp.float32)  # standard-normal noise for sampling
    a = jax.random.normal(k_a, (B, adim), jnp.float32)

    pi, logp, logp_pi, mu = gaussian_policy_forward(x, params, eps, a)
    jax.block_until_ready((pi, logp, logp_pi, mu))

    pi_r, logp_r, logp_pi_r, mu_r = _reference(x, params, eps, a)
    assert jnp.allclose(mu, mu_r, atol=1e-5)
    assert jnp.allclose(pi, pi_r, atol=1e-5)
    assert jnp.allclose(logp_pi, logp_pi_r, atol=1e-4)
    assert jnp.allclose(logp, logp_r, atol=1e-4)

    # Multi-tile case with padding (exercises grid pipelining + batch padding path).
    B2 = 200
    x2 = jax.random.normal(k_x2, (B2, odim), jnp.float32)
    eps2 = jax.random.normal(k_eps2, (B2, adim), jnp.float32)
    a2 = jax.random.normal(k_a2, (B2, adim), jnp.float32)

    pi2, logp2, logp_pi2, mu2 = gaussian_policy_forward(x2, params, eps2, a2, tile_b=64)
    jax.block_until_ready((pi2, logp2, logp_pi2, mu2))

    pi2_r, logp2_r, logp_pi2_r, mu2_r = _reference(x2, params, eps2, a2)
    assert jnp.allclose(mu2, mu2_r, atol=1e-5)
    assert jnp.allclose(pi2, pi2_r, atol=1e-5)
    assert jnp.allclose(logp_pi2, logp_pi2_r, atol=1e-4)
    assert jnp.allclose(logp2, logp2_r, atol=1e-4)

    print("KERNEL_OK")
</pallas_src>

<mosaic_0001>
module attributes {stable_mosaic.version = 11 : i64} {
  func.func @gaussian_policy_kernel(%arg0: i32, %arg1: memref<8x24xf32, #tpu.memory_space<vmem>>, %arg2: memref<8x8xf32, #tpu.memory_space<vmem>>, %arg3: memref<8x8xf32, #tpu.memory_space<vmem>>, %arg4: memref<24x64xf32, #tpu.memory_space<vmem>>, %arg5: memref<1x64xf32, #tpu.memory_space<vmem>>, %arg6: memref<64x64xf32, #tpu.memory_space<vmem>>, %arg7: memref<1x64xf32, #tpu.memory_space<vmem>>, %arg8: memref<64x8xf32, #tpu.memory_space<vmem>>, %arg9: memref<1x8xf32, #tpu.memory_space<vmem>>, %arg10: memref<1x8xf32, #tpu.memory_space<vmem>>, %arg11: memref<8x18xf32, #tpu.memory_space<vmem>>) attributes {dimension_semantics = [#tpu.dimension_semantics<parallel>], iteration_bounds = array<i64: 1>, scalar_prefetch = 0 : i64, scratch_operands = 0 : i64, tpu.core_type = #tpu.core_type<tc>, window_params = [{transform_indices = @transform_0, window_bounds = array<i64: 8, 24>}, {transform_indices = @transform_1, window_bounds = array<i64: 8, 8>}, {transform_indices = @transform_2, window_bounds = array<i64: 8, 8>}, {pipeline_mode = #tpu.pipeline_mode<synchronous>, transform_indices = @transform_3, window_bounds = array<i64: 24, 64>}, {pipeline_mode = #tpu.pipeline_mode<synchronous>, transform_indices = @transform_4, window_bounds = array<i64: 1, 64>}, {pipeline_mode = #tpu.pipeline_mode<synchronous>, transform_indices = @transform_5, window_bounds = array<i64: 64, 64>}, {pipeline_mode = #tpu.pipeline_mode<synchronous>, transform_indices = @transform_6, window_bounds = array<i64: 1, 64>}, {pipeline_mode = #tpu.pipeline_mode<synchronous>, transform_indices = @transform_7, window_bounds = array<i64: 64, 8>}, {pipeline_mode = #tpu.pipeline_mode<synchronous>, transform_indices = @transform_8, window_bounds = array<i64: 1, 8>}, {pipeline_mode = #tpu.pipeline_mode<synchronous>, transform_indices = @transform_9, window_bounds = array<i64: 1, 8>}, {transform_indices = @transform_10, window_bounds = array<i64: 8, 18>}]} {
    %c0 = arith.constant 0 : index
    %c0_0 = arith.constant 0 : index
    %0 = vector.load %arg1[%c0, %c0_0] : memref<8x24xf32, #tpu.memory_space<vmem>>, vector<8x24xf32>
    %c0_1 = arith.constant 0 : index
    %c0_2 = arith.constant 0 : index
    %1 = vector.load %arg4[%c0_1, %c0_2] : memref<24x64xf32, #tpu.memory_space<vmem>>, vector<24x64xf32>
    %cst = arith.constant dense<0.000000e+00> : vector<8x64xf32>
    %2 = tpu.matmul %0, %1, %cst {dimension_numbers = #tpu.dot_dimension_numbers<[1], [0], [0], [1], [0, 0, 1, 1], [], []>} : vector<8x24xf32>, vector<24x64xf32>, vector<8x64xf32> -> vector<8x64xf32>
    %c0_3 = arith.constant 0 : index
    %c0_4 = arith.constant 0 : index
    %3 = vector.load %arg5[%c0_3, %c0_4] : memref<1x64xf32, #tpu.memory_space<vmem>>, vector<1x64xf32>
    %4 = vector.broadcast %3 : vector<1x64xf32> to vector<8x64xf32>
    %5 = arith.addf %2, %4 : vector<8x64xf32>
    %cst_5 = arith.constant 0.000000e+00 : f32
    %6 = vector.broadcast %cst_5 : f32 to vector<8x64xf32>
    %7 = arith.maximumf %5, %6 : vector<8x64xf32>
    %c0_6 = arith.constant 0 : index
    %c0_7 = arith.constant 0 : index
    %8 = vector.load %arg6[%c0_6, %c0_7] : memref<64x64xf32, #tpu.memory_space<vmem>>, vector<64x64xf32>
    %cst_8 = arith.constant dense<0.000000e+00> : vector<8x64xf32>
    %9 = tpu.matmul %7, %8, %cst_8 {dimension_numbers = #tpu.dot_dimension_numbers<[1], [0], [0], [1], [0, 0, 1, 1], [], []>} : vector<8x64xf32>, vector<64x64xf32>, vector<8x64xf32> -> vector<8x64xf32>
    %c0_9 = arith.constant 0 : index
    %c0_10 = arith.constant 0 : index
    %10 = vector.load %arg7[%c0_9, %c0_10] : memref<1x64xf32, #tpu.memory_space<vmem>>, vector<1x64xf32>
    %11 = vector.broadcast %10 : vector<1x64xf32> to vector<8x64xf32>
    %12 = arith.addf %9, %11 : vector<8x64xf32>
    %cst_11 = arith.constant 0.000000e+00 : f32
    %13 = vector.broadcast %cst_11 : f32 to vector<8x64xf32>
    %14 = arith.maximumf %12, %13 : vector<8x64xf32>
    %c0_12 = arith.constant 0 : index
    %c0_13 = arith.constant 0 : index
    %15 = vector.load %arg8[%c0_12, %c0_13] : memref<64x8xf32, #tpu.memory_space<vmem>>, vector<64x8xf32>
    %cst_14 = arith.constant dense<0.000000e+00> : vector<8x8xf32>
    %16 = tpu.matmul %14, %15, %cst_14 {dimension_numbers = #tpu.dot_dimension_numbers<[1], [0], [0], [1], [0, 0, 1, 1], [], []>} : vector<8x64xf32>, vector<64x8xf32>, vector<8x8xf32> -> vector<8x8xf32>
    %c0_15 = arith.constant 0 : index
    %c0_16 = arith.constant 0 : index
    %17 = vector.load %arg9[%c0_15, %c0_16] : memref<1x8xf32, #tpu.memory_space<vmem>>, vector<1x8xf32>
    %18 = vector.broadcast %17 : vector<1x8xf32> to vector<8x8xf32>
    %19 = arith.addf %16, %18 : vector<8x8xf32>
    %c0_17 = arith.constant 0 : index
    %c0_18 = arith.constant 0 : index
    %20 = vector.load %arg10[%c0_17, %c0_18] : memref<1x8xf32, #tpu.memory_space<vmem>>, vector<1x8xf32>
    %21 = math.exp %20 : vector<1x8xf32>
    %cst_19 = arith.constant -2.000000e+00 : f32
    %22 = vector.broadcast %cst_19 : f32 to vector<1x8xf32>
    %23 = arith.mulf %22, %20 : vector<1x8xf32>
    %24 = math.exp %23 : vector<1x8xf32>
    %cst_20 = arith.constant 5.000000e-01 : f32
    %25 = vector.broadcast %cst_20 : f32 to vector<1x8xf32>
    %26 = arith.mulf %25, %24 : vector<1x8xf32>
    %c0_21 = arith.constant 0 : index
    %c0_22 = arith.constant 0 : index
    %27 = vector.load %arg2[%c0_21, %c0_22] : memref<8x8xf32, #tpu.memory_space<vmem>>, vector<8x8xf32>
    %28 = vector.broadcast %21 : vector<1x8xf32> to vector<8x8xf32>
    %29 = arith.mulf %28, %27 : vector<8x8xf32>
    %30 = arith.addf %19, %29 : vector<8x8xf32>
    %cst_23 = arith.constant 6.28318548 : f32
    %31 = math.log %cst_23 : f32
    %cst_24 = arith.constant 5.000000e-01 : f32
    %32 = arith.mulf %cst_24, %31 : f32
    %33 = vector.shape_cast %20 : vector<1x8xf32> to vector<1x1x8xf32>
    %cst_25 = arith.constant dense<0.000000e+00> : vector<1xf32>
    %34 = vector.multi_reduction <add>, %33, %cst_25 [1, 2] : vector<1x1x8xf32> to vector<1xf32>
    %35 = vector.shape_cast %34 : vector<1xf32> to vector<1x1x1xf32>
    %36 = vector.extract %35[0, 0, 0] : f32 from vector<1x1x1xf32>
    %cst_26 = arith.constant 8.000000e+00 : f32
    %37 = arith.mulf %cst_26, %32 : f32
    %38 = arith.addf %36, %37 : f32
    %cst_27 = arith.constant 0.000000e+00 : f32
    %39 = arith.subf %cst_27, %38 : f32
    %40 = arith.mulf %29, %29 : vector<8x8xf32>
    %41 = vector.broadcast %26 : vector<1x8xf32> to vector<8x8xf32>
    %42 = arith.mulf %40, %41 : vector<8x8xf32>
    %cst_28 = arith.constant dense<0.000000e+00> : vector<8xf32>
    %43 = vector.multi_reduction <add>, %42, %cst_28 [1] : vector<8x8xf32> to vector<8xf32>
    %44 = vector.shape_cast %43 : vector<8xf32> to vector<8x1xf32>
    %45 = vector.broadcast %39 : f32 to vector<8x1xf32>
    %46 = arith.subf %45, %44 : vector<8x1xf32>
    %c0_29 = arith.constant 0 : index
    %c0_30 = arith.constant 0 : index
    %47 = vector.load %arg3[%c0_29, %c0_30] : memref<8x8xf32, #tpu.memory_space<vmem>>, vector<8x8xf32>
    %48 = arith.subf %47, %19 : vector<8x8xf32>
    %49 = arith.mulf %48, %48 : vector<8x8xf32>
    %50 = vector.broadcast %26 : vector<1x8xf32> to vector<8x8xf32>
    %51 = arith.mulf %49, %50 : vector<8x8xf32>
    %cst_31 = arith.constant dense<0.000000e+00> : vector<8xf32>
    %52 = vector.multi_reduction <add>, %51, %cst_31 [1] : vector<8x8xf32> to vector<8xf32>
    %53 = vector.shape_cast %52 : vector<8xf32> to vector<8x1xf32>
    %54 = vector.broadcast %39 : f32 to vector<8x1xf32>
    %55 = arith.subf %54, %53 : vector<8x1xf32>
    %56 = tpu.concatenate %30, %19, %55, %46 in 1 : vector<8x8xf32>, vector<8x8xf32>, vector<8x1xf32>, vector<8x1xf32> -> vector<8x18xf32>
    %c0_32 = arith.constant 0 : index
    %c0_33 = arith.constant 0 : index
    %57 = vector.load %arg11[%c0_32, %c0_33] : memref<8x18xf32, #tpu.memory_space<vmem>>, vector<8x18xf32>
    tpu.vector_store %arg11[%c0_32, %c0_33], %56 {strides = array<i32>} : memref<8x18xf32, #tpu.memory_space<vmem>>, vector<8x18xf32>,
    return
  }
  func.func @transform_0(%arg0: i32) -> (i32, i32) {
    %c0_i32 = arith.constant 0 : i32
    %c0_i32_0 = arith.constant 0 : i32
    return %arg0, %c0_i32 : i32, i32
  }
  func.func @transform_1(%arg0: i32) -> (i32, i32) {
    %c0_i32 = arith.constant 0 : i32
    %c0_i32_0 = arith.constant 0 : i32
    return %arg0, %c0_i32 : i32, i32
  }
  func.func @transform_2(%arg0: i32) -> (i32, i32) {
    %c0_i32 = arith.constant 0 : i32
    %c0_i32_0 = arith.constant 0 : i32
    return %arg0, %c0_i32 : i32, i32
  }
  func.func @transform_3(%arg0: i32) -> (i32, i32) {
    %c0_i32 = arith.constant 0 : i32
    %c0_i32_0 = arith.constant 0 : i32
    %c0_i32_1 = arith.constant 0 : i32
    return %c0_i32, %c0_i32_0 : i32, i32
  }
  func.func @transform_4(%arg0: i32) -> (i32, i32) {
    %c0_i32 = arith.constant 0 : i32
    %c0_i32_0 = arith.constant 0 : i32
    %c0_i32_1 = arith.constant 0 : i32
    return %c0_i32, %c0_i32_0 : i32, i32
  }
  func.func @transform_5(%arg0: i32) -> (i32, i32) {
    %c0_i32 = arith.constant 0 : i32
    %c0_i32_0 = arith.constant 0 : i32
    %c0_i32_1 = arith.constant 0 : i32
    return %c0_i32, %c0_i32_0 : i32, i32
  }
  func.func @transform_6(%arg0: i32) -> (i32, i32) {
    %c0_i32 = arith.constant 0 : i32
    %c0_i32_0 = arith.constant 0 : i32
    %c0_i32_1 = arith.constant 0 : i32
    return %c0_i32, %c0_i32_0 : i32, i32
  }
  func.func @transform_7(%arg0: i32) -> (i32, i32) {
    %c0_i32 = arith.constant 0 : i32
    %c0_i32_0 = arith.constant 0 : i32
    %c0_i32_1 = arith.constant 0 : i32
    return %c0_i32, %c0_i32_0 : i32, i32
  }
  func.func @transform_8(%arg0: i32) -> (i32, i32) {
    %c0_i32 = arith.constant 0 : i32
    %c0_i32_0 = arith.constant 0 : i32
    %c0_i32_1 = arith.constant 0 : i32
    return %c0_i32, %c0_i32_0 : i32, i32
  }
  func.func @transform_9(%arg0: i32) -> (i32, i32) {
    %c0_i32 = arith.constant 0 : i32
    %c0_i32_0 = arith.constant 0 : i32
    %c0_i32_1 = arith.constant 0 : i32
    return %c0_i32, %c0_i32_0 : i32, i32
  }
  func.func @transform_10(%arg0: i32) -> (i32, i32) {
    %c0_i32 = arith.constant 0 : i32
    %c0_i32_0 = arith.constant 0 : i32
    return %arg0, %c0_i32 : i32, i32
  }
}

</mosaic_0001>

<bundles_post_ra>
// kernel: tpu_custom_call.1
= control target key start
LH: loop header
LB: loop body
LE: loop exit
PB: predicated region body
PF: predicated region fallthrough
CT: control target
= control target key end

     0   :  { %15 = vsyncpa [#allocation3], 0  ;;  %s811_s0 = inlined_call_operand.hbm [shape: f32[8,24], index: 0, kind: input, shape index: {}]   ;;  %s812_s1 = inlined_call_operand.hbm [shape: f32[8,8], index: 1, kind: input, shape index: {}]   ;;  %s813_s2 = inlined_call_operand.hbm [shape: f32[8,8], index: 2, kind: input, shape index: {}]   ;;  %s814_s3 = inlined_call_operand.vmem [shape: f32[24,64], index: 3, kind: input, shape index: {}]   ;;  %s815_s4 = inlined_call_operand.vmem [shape: f32[1,64], index: 4, kind: input, shape index: {}]   ;;  %s816_s5 = inlined_call_operand.vmem [shape: f32[64,64], index: 5, kind: input, shape index: {}]   ;;  %s817_s6 = inlined_call_operand.vmem [shape: f32[1,64], index: 6, kind: input, shape index: {}]   ;;  %s818_s7 = inlined_call_operand.vmem [shape: f32[64,8], index: 7, kind: input, shape index: {}]   ;;  %s819_s8 = inlined_call_operand.vmem [shape: f32[1,8], index: 8, kind: input, shape index: {}]   ;;  %s820_s9 = inlined_call_operand.vmem [shape: f32[1,8], index: 9, kind: input, shape index: {}]   ;;  %s821_s10 = inlined_call_operand.hbm [shape: f32[8,18], index: 10, kind: output, shape index: {}]  }
   0x1   :  { %16 = vsyncpa [#allocation6], 0 }
   0x2   :  { %17 = vsyncpa [#allocation4], 0  ;;  %s623_s13 = smov [#allocation5]   ;;  %s624_s15 = smov [#allocation2]  }
   0x3   :  { %s34_s14 = sshll.u32 %s623_s13, 4  ;;  %s24_s16 = sshll.u32 %s624_s15, 4  ;;  %s35_s14 = int_to_ptr.vmem [resolvable:$true] %s34_s14  ;;  %s25_s16 = int_to_ptr.vmem [resolvable:$true] %s24_s16 }
   0x4   :  { %s529_s19 = scalar_lea.hbm %s812_s1, 128 }
   0x5   :  { %p530_p0 = scmp.ne.s32.totalorder %s812_s1, %s529_s19  ;;  %p533_p1 = scmp.lt.u32.totalorder %s529_s19, %s812_s1 }
   0x7   :  { %p535_p2 = pnand %p533_p1, %p530_p0 }
   0x9   :  { %538 = shalt.err (!%p535_p2)
}
   0xa   :  { %s539_s24 = scalar_lea.vmem %s35_s14, 128  ;;  %p544_p4 = scmp.lt.s32.totalorder %s35_s14, %s35_s14 }
   0xb   :  { %p540_p3 = scmp.ne.s32.totalorder %s35_s14, %s539_s24  ;;  %p545_p5 = scmp.lt.s32.totalorder %s539_s24, %s539_s24 }
   0xd   :  { %p546_p6 = por %p545_p5, %p544_p4 }
   0xf   :  { %p547_p7 = pnand %p546_p6, %p540_p3 }
  0x11   :  { %550 = shalt.err (!%p547_p7)
}
  0x12   :  { %37 = dma.hbm_to_vmem [thread:$0]  %s812_s1, 128, %s35_s14, [#allocation6]  }
  0x13   :  { %s551_s29 = scalar_lea.hbm %s811_s0, 128 }
  0x14   :  { %p552_p8 = scmp.ne.s32.totalorder %s811_s0, %s551_s29  ;;  %p555_p9 = scmp.lt.u32.totalorder %s551_s29, %s811_s0 }
  0x16   :  { %p557_p10 = pnand %p555_p9, %p552_p8 }
  0x18   :  { %560 = shalt.err (!%p557_p10)
}
  0x19   :  { %s561_s15 = scalar_lea.vmem %s25_s16, 128  ;;  %p566_p12 = scmp.lt.s32.totalorder %s25_s16, %s25_s16 }
  0x1a   :  { %p562_p11 = scmp.ne.s32.totalorder %s25_s16, %s561_s15  ;;  %p567_p13 = scmp.lt.s32.totalorder %s561_s15, %s561_s15 }
  0x1c   :  { %p568_p0 = por %p567_p13, %p566_p12 }
  0x1e   :  { %p569_p1 = pnand %p568_p0, %p562_p11 }
  0x20   :  { %572 = shalt.err (!%p569_p1)
}
  0x21   :  { %27 = dma.hbm_to_vmem [thread:$0]  %s811_s0, 128, %s25_s16, [#allocation3]  }
  0x22   :  { %s625_s17 = smov [#allocation7]   ;;  %s573_s21 = scalar_lea.hbm %s813_s2, 128 }
  0x23   :  { %s44_s18 = sshll.u32 %s625_s17, 4  ;;  %p574_p2 = scmp.ne.s32.totalorder %s813_s2, %s573_s21  ;;  %s45_s18 = int_to_ptr.vmem [resolvable:$true] %s44_s18 }
  0x24   :  { %p577_p3 = scmp.lt.u32.totalorder %s573_s21, %s813_s2 }
  0x26   :  { %p579_p4 = pnand %p577_p3, %p574_p2 }
  0x28   :  { %582 = shalt.err (!%p579_p4)
}
  0x29   :  { %s583_s26 = scalar_lea.vmem %s45_s18, 128  ;;  %p588_p6 = scmp.lt.s32.totalorder %s45_s18, %s45_s18 }
  0x2a   :  { %p584_p5 = scmp.ne.s32.totalorder %s45_s18, %s583_s26  ;;  %p589_p7 = scmp.lt.s32.totalorder %s583_s26, %s583_s26 }
  0x2c   :  { %p590_p8 = por %p589_p7, %p588_p6 }
  0x2e   :  { %p591_p9 = pnand %p590_p8, %p584_p5 }
  0x30   :  { %594 = shalt.err (!%p591_p9)
}
  0x31   :  { %47 = dma.hbm_to_vmem [thread:$0]  %s813_s2, 128, %s45_s18, [#allocation6]  }
  0x32   :  { %617 = dma.done.wait [#allocation3], 128  }
  0x33   :  { %618 = vsyncadd [#allocation3], 4294967168 }
  0x34   :  { %619 = dma.done.wait [#allocation6], 256  }
  0x35   :  { %620 = vsyncadd [#allocation6], 4294967040  ;;  %v626_v0 = vmov 0.0|0.0   ;;  %vm627_vm0 = vmmov 0   ;;  %v628_v1 = vmov 0.0   ;;  %v72_v2 = vld [vmem:[%s814_s3] sm:$0xff]  ;;  %v344_v40 = vlaneseq }
  0x36   :  { %488 = vmatprep.subr.bf16.mxu0 %v626_v0  ;;  %447 = vmatprep.mubr.msk.f32.mxu0 %vm627_vm0, %v628_v1  ;;  %v73_v3 = vld [vmem:[%s814_s3 + $0x8] sm:$0xff]  ;;  %v157_v5 = vld [vmem:[%s816_s5] sm:$0xff]  ;;  %v159_v8 = vld [vmem:[%s816_s5 + $0x10] sm:$0xff]  ;;  %vm82_vm1 = vcmask 195584   ;;  %vm172_vm2 = vcmask 523264   ;;  %vm351_vm3 = vcmask 57344  }
  0x37   :  { %491 = vmatprep.subr.bf16.mxu1 %v626_v0  ;;  %466 = vmatprep.mubr.msk.f32.mxu1 %vm627_vm0, %v628_v1  ;;  %v489_v4 = vpack.c.bf16 %v73_v3, %v72_v2  ;;  %v158_v6 = vld [vmem:[%s816_s5 + $0x8] sm:$0xff]  ;;  %v160_v9 = vld [vmem:[%s816_s5 + $0x18] sm:$0xff]  ;;  %v74_v10 = vld [vmem:[%s814_s3 + $0x10] sm:$0xff]  ;;  %v345_v42 = vshrl.u32 %v344_v40, 7  ;;  %vm372_vm4 = vcmask 64512   ;;  %vm391_vm5 = vcmask 130048  }
  0x38   :  { %v492_v7 = vpack.c.bf16 %v158_v6, %v157_v5  ;;  %v495_v11 = vpack.c.bf16 %v160_v9, %v159_v8  ;;  %v71_v12 = vld [vmem:[#allocation2] sm:$0xff]  ;;  %v162_v14 = vld [vmem:[%s816_s5 + $0x28] sm:$0xff]  ;;  %v163_v16 = vld [vmem:[%s816_s5 + $0x30] sm:$0xff]  ;;  %vm393_vm6 = vcmask 138240   ;;  %vm395_vm7 = vcmask 146432  }
  0x39   :  { %490 = vmatpush3.bf16.msra.mxu0 %v489_v4  ;;  %v161_v13 = vld [vmem:[%s816_s5 + $0x20] sm:$0xff]  ;;  %v164_v17 = vld [vmem:[%s816_s5 + $0x38] sm:$0xff]  ;;  %v248_v20 = vld [vmem:[%s818_s7 + $0x8] sm:$0xff]  ;;  %v346_v43 = vsub.s32 0, %v345_v42 }
  0x3a   :  { %445 = vmatprep.subr.mxu0 %v628_v1  ;;  %493 = vmatpush3.bf16.msra.mxu1 %v492_v7  ;;  %v498_v15 = vpack.c.bf16 %v162_v14, %v161_v13  ;;  %v501_v18 = vpack.c.bf16 %v164_v17, %v163_v16  ;;  %v247_v19 = vld [vmem:[%s818_s7] sm:$0xff]  ;;  %v249_v21 = vld [vmem:[%s818_s7 + $0x10] sm:$0xff]  ;;  %v250_v23 = vld [vmem:[%s818_s7 + $0x18] sm:$0xff] }
  0x3b   :  { %494 = vmatprep.subr.bf16.mxu1 %v626_v0  ;;  %v504_v22 = vpack.c.bf16 %v248_v20, %v247_v19  ;;  %v507_v24 = vpack.c.bf16 %v250_v23, %v249_v21  ;;  %v251_v25 = vld [vmem:[%s818_s7 + $0x20] sm:$0xff]  ;;  %v252_v26 = vld [vmem:[%s818_s7 + $0x28] sm:$0xff]  ;;  %v253_v33 = vld [vmem:[%s818_s7 + $0x30] sm:$0xff] }
  0x3c   :  { %v510_v27 = vpack.c.bf16 %v252_v26, %v251_v25  ;;  %v413_v28 = vld [vmem:[%s815_s4] ss:$0 sm:$0xff]  ;;  %v254_v34 = vld [vmem:[%s818_s7 + $0x38] sm:$0xff]  ;;  %v342_v45 = vld [vmem:[#allocation5] sm:$0xff] }
  0x3d   :  { %446 = vmatpush3.msra.mxu0 %v74_v10  ;;  %v513_v35 = vpack.c.bf16 %v254_v34, %v253_v33  ;;  %v335_v36 = vld [vmem:[%s820_s9] sm:$0x1]  ;;  %v378_v4 = vld [vmem:[#allocation7] sm:$0xff] }
  0x3e   :  { %448 = vmatmul.mubr.msk.f32.vlgmr.msra.gmra.mrb[0].mxu0 %vm82_vm1, %v71_v12  ;;  %496 = vmatpush3.bf16.msra.mxu1 %v495_v11  ;;  %v352_v37 = vsel %vm351_vm3, %v335_v36, 0.0  ;;  %v336_v38 = vmul.f32 1.442695, %v335_v36  ;;  %v338_v39 = vmul.f32 -2.0, %v335_v36  ;;  %v415_v54 = vld [vmem:[%s817_s6] ss:$0 sm:$0xff] }
  0x3f   :  { %497 = vmatprep.subr.bf16.mxu1 %v626_v0  ;;  %503 = vmatprep.subr.bf16.mxu0 %v626_v0  ;;  %v417_v2 = vld [vmem:[%s819_s8] ss:$0 sm:$0xff]  ;;  %s629_s6 = smov 8   ;;  %s630_s8 = smov [#allocation8]  }
  0x40   :  { %485 = vmatprep.mubr.msk.f32.mxu0 %vm627_vm0, %v628_v1  ;;  %505 = vmatpush3.bf16.msra.mxu0 %v504_v22  ;;  %525 = vpow2.f32 %v336_v38  ;;  %v339_v41 = vmul.f32 1.442695, %v338_v39  ;;  %s403_s26 = sshll.u32 %s630_s8, 4  ;;  %s404_s26 = int_to_ptr.vmem [resolvable:$true] %s403_s26 }
  0x41   :  { %506 = vmatprep.subr.bf16.mxu0 %v626_v0  ;;  %353 = vadd.xlane.f32.xlu0 %v352_v37  ;;  %s595_s0 = scalar_lea.vmem %s404_s26, 128  ;;  %p600_p11 = scmp.lt.s32.totalorder %s404_s26, %s404_s26 }
  0x42   :  { %499 = vmatpush3.bf16.msra.mxu1 %v498_v15  ;;  %527 = vpow2.f32 %v339_v41  ;;  %p596_p10 = scmp.ne.s32.totalorder %s404_s26, %s595_s0  ;;  %p601_p12 = scmp.lt.s32.totalorder %s595_s0, %s595_s0 }
  0x43   :  { %500 = vmatprep.subr.bf16.mxu1 %v626_v0 }
  0x44   :  { %508 = vmatpush3.bf16.msra.mxu0 %v507_v24  ;;  %p602_p13 = por %p601_p12, %p600_p11 }
  0x45   :  { %509 = vmatprep.subr.bf16.mxu0 %v626_v0 }
  0x46   :  { %502 = vmatpush3.bf16.msra.mxu1 %v501_v18  ;;  %p603_p0 = pnand %p602_p13, %p596_p10 }
  0x48   :  { %511 = vmatpush3.bf16.msra.mxu0 %v510_v27 }
  0x49   :  { %512 = vmatprep.subr.bf16.mxu0 %v626_v0 }
  0x4a   :  { %v526_v44 = vpop.eup %525 }
  0x4b   :  { %v347_v46 = vrot.slane %v526_v44, %v346_v43 }
  0x4c   :  { %514 = vmatpush3.bf16.msra.mxu0 %v513_v35  ;;  %v528_v47 = vpop.eup %527 }
  0x4d   :  { %v341_v48 = vmul.f32 0.5, %v528_v47  ;;  %v349_v49 = vmul.f32 %v347_v46, %v342_v45 }
  0x4f   :  { %v364_v50 = vmul.f32 %v349_v49, %v349_v49  ;;  %v369_v51 = vrot.slane %v341_v48, %v346_v43 }
  0x51   :  { %v371_v52 = vmul.f32 %v369_v51, %v364_v50 }
  0x53   :  { %v373_v53 = vsel %vm372_vm4, %v371_v52, 0.0 }
  0x54   :  { %374 = vadd.xlane.f32.xlu1 %v373_v53 }
  0xce   :  { %v354_v59 = vpop.xlane.xlu0 %353 }
  0xcf   :  { %v355_v60 = vrot.slane %v354_v59, 4 }
  0xd1   :  { %v356_v61 = vadd.f32 %v355_v60, %v354_v59 }
  0xd3   :  { %v357_v62 = vrot.slane %v356_v61, 2 }
  0xd5   :  { %v358_v63 = vadd.f32 %v357_v62, %v356_v61 }
  0xd7   :  { %v359_v0 = vrot.slane %v358_v63, 1 }
  0xd9   :  { %v360_v1 = vadd.f32 %v359_v0, %v358_v63 }
  0xdb   :  { %515 = vpush %v360_v1 }
  0xe1   :  { %v375_v11 = vpop.xlane.xlu1 %374 }
 0x10c   :  { %s516_s3 = spop %515 }
 0x10d   :  { %s362_s24 = sadd.f32 7.351508, %s516_s3 }
 0x10f   :  { %s363_s25 = ssub.f32 0.0, %s362_s24 }
 0x111   :  { %v152_v29 = vpop.f32.mrb[0].mxu0  ;;  %v376_v13 = vstv %s363_s25 }
 0x112   :  { %v153_v30 = vadd.f32 %v413_v28, %v152_v29  ;;  %v449_v31 = vpop.f32.mrb[1].mxu0  ;;  %v377_v18 = vsub.f32 %v376_v13, %v375_v11 }
 0x114   :  { %v156_v32 = vmax.f32 %v153_v30, 0.0 }
 0x116   :  { %467 = vmatmul.mubr.msk.f32.vlgmr.msra.gmra.mrb[0].mxu1 %vm172_vm2, %v156_v32 }
 0x1e9   :  { %v242_v55 = vpop.f32.mrb[0].mxu1 }
 0x1ea   :  { %v243_v56 = vadd.f32 %v415_v54, %v242_v55  ;;  %v468_v57 = vpop.f32.mrb[1].mxu1 }
 0x1ec   :  { %v246_v58 = vmax.f32 %v243_v56, 0.0 }
 0x1ee   :  { %486 = vmatmul.mubr.msk.f32.vlgmr.msra.gmra.mrb[2].mxu0 %vm172_vm2, %v246_v58 }
 0x2c1   :  { %v331_v3 = vpop.f32.mrb[2].mxu0 }
 0x2c2   :  { %v332_v5 = vadd.f32 %v417_v2, %v331_v3  ;;  %v487_v6 = vpop.f32.mrb[3].mxu0 }
 0x2c4   :  { %387 = vrot.lane.b32.xlu1 %v332_v5, %s629_s6  ;;  %v379_v7 = vsub.f32 %v378_v4, %v332_v5  ;;  %v350_v14 = vadd.f32 %v349_v49, %v332_v5 }
 0x2c6   :  { %v380_v8 = vmul.f32 %v379_v7, %v379_v7 }
 0x2c8   :  { %v381_v9 = vmul.f32 %v380_v8, %v369_v51 }
 0x2ca   :  { %v382_v10 = vsel %vm372_vm4, %v381_v9, 0.0 }
 0x2cb   :  { %383 = vadd.xlane.f32.xlu0 %v382_v10 }
 0x336   :  { %v388_v12 = vpop.permute.xlu1 %387 }
 0x337   :  { %v390_v17 = vsel %vm372_vm4, %v350_v14, %v388_v12 }
 0x358   :  { %v384_v15 = vpop.xlane.xlu0 %383 }
 0x359   :  { %v385_v16 = vsub.f32 %v376_v13, %v384_v15 }
 0x35b   :  { %v392_v19 = vsel %vm391_vm5, %v390_v17, %v385_v16 }
 0x35c   :  { %v394_v20 = vsel %vm393_vm6, %v392_v19, %v377_v18 }
 0x35d   :  { %396 = vst.msk [vmem:[#allocation8] sm:$0xff] %vm395_vm7, %v394_v20 }
 0x35e   :  { %606 = shalt.err (!%p603_p0)
}
 0x35f   :  { %s607_s28 = scalar_lea.hbm %s821_s10, 128 }
 0x360   :  { %p608_p1 = scmp.ne.s32.totalorder %s821_s10, %s607_s28  ;;  %p611_p2 = scmp.lt.u32.totalorder %s607_s28, %s821_s10 }
 0x362   :  { %p613_p3 = pnand %p611_p2, %p608_p1 }
 0x364   :  { %616 = shalt.err (!%p613_p3)
}
 0x365   :  { %406 = dma.vmem_to_hbm [thread:$0]  %s404_s26, 128, %s821_s10, [#allocation4]  }
 0x366   :  { %621 = dma.done.wait [#allocation4], 128  }
 0x367   :  { %622 = vsyncadd [#allocation4], 4294967168 }
 0x368   :  { %410 = vsyncpa [#allocation3], 1 }
 0x369   :  { %411 = vsyncpa [#allocation6], 1 }
 0x36a   :  { %412 = vsyncpa [#allocation4], 1 }

</bundles_post_ra>
